<compile_context>
chip_gen: v7x
topology: tpu7x:2x2x1
jax: 0.10.0
libtpu: 0.0.40
codegen_flags: <defaults>
</compile_context>

<pallas_src>
import functools

import jax
import jax.numpy as jnp
from jax.experimental import pallas as pl
from jax.experimental.pallas import tpu as pltpu


def _shift_channels(pooled, off):
    """Return pooled[:, c + off] with zero fill for out-of-range channels."""
    bt, c = pooled.shape
    if off == 0:
        return pooled
    if abs(off) >= c:
        return jnp.zeros_like(pooled)
    if c % 128 == 0:
        # Lane-aligned channel axis: XLU rotate (doesn't compete with VALU/ld/st
        # slots) + one select to zero the wrapped lanes.
        rolled = pltpu.roll(pooled, shift=(-off) % c, axis=1)
        lane = jax.lax.broadcasted_iota(jnp.int32, (bt, c), 1)
        if off > 0:
            return jnp.where(lane < c - off, rolled, 0.0)
        return jnp.where(lane >= -off, rolled, 0.0)
    # Small / unaligned channel count: tiny zero-padded shift (epilogue-only cost).
    if off > 0:
        return jnp.concatenate(
            [pooled[:, off:], jnp.zeros((bt, off), pooled.dtype)], axis=1)
    return jnp.concatenate(
        [jnp.zeros((bt, -off), pooled.dtype), pooled[:, :c + off]], axis=1)


def mca_gate_kernel(wg_ref, ck_ref, x_ref, o_ref, *, hw_true, k):
    """Fused avg+std pooling, 1xK channel conv, sigmoid gate, gated multiply.

    wg_ref: SMEM (2,) f32  -- folded pooling weights (0.5 + sigmoid(w)[0:2])
    ck_ref: SMEM (k,) f32  -- taps of Conv2d(1, 1, (1, k), bias=False)
    x_ref : VMEM (Bt, C, HW) in the input's native dtype
    o_ref : VMEM (Bt, C, HW) in the input's native dtype
    """
    x = x_ref[...]                                   # (Bt, C, HW)
    xf = x.astype(jnp.float32)

    # Two-pass mean / unbiased std over the spatial (lane) axis: avoids the
    # catastrophic cancellation of the E[x^2]-E[x]^2 form and matches the
    # PyTorch reference numerically. The extra VMEM pass hides under the
    # HBM-bound DMA.
    mean = jnp.sum(xf, axis=-1) * (1.0 / hw_true)    # (Bt, C)
    diff = xf - mean[:, :, None]
    nm1 = hw_true - 1 if hw_true > 1 else 1          # HW == 1: std := 0 (torch ref -> nan)
    var = jnp.sum(diff * diff, axis=-1) * (1.0 / nm1)
    std = jnp.sqrt(var)

    # 0.5*(mean+std) + w0*mean + w1*std, with 0.5 folded into wg in the wrapper.
    pooled = wg_ref[0] * mean + wg_ref[1] * std      # (Bt, C), channels on lanes

    # 1xK cross-correlation across channels with zero padding, as k shifted FMAs
    # (no dense (C, C) banded matmul, no MXU N=1 waste).
    pad = (k - 1) // 2
    conv = jnp.zeros_like(pooled)
    for t in range(k):
        conv = conv + ck_ref[t] * _shift_channels(pooled, t - pad)

    gate = jax.nn.sigmoid(conv)                      # (Bt, C) f32
    o_ref[...] = (xf * gate[:, :, None]).astype(o_ref.dtype)


def mca_gate(x, weight_param, conv_kernel, *, block_bytes_target=8 * 1024 * 1024):
    """MCAGate forward. x: (B, C, H, W) any float dtype; weight_param: (3,); conv_kernel: (k,)."""
    B, C, H, W = x.shape
    HW = H * W
    # Native dtype end-to-end: no pad / slice / up-cast copies in HBM.
    xf = x.reshape(B, C, HW)
    itemsize = jnp.dtype(x.dtype).itemsize

    per_b_native = C * HW * itemsize
    per_b_f32 = C * HW * 4
    # Per batch element resident in VMEM: double-buffered in + out blocks plus
    # ~3 f32 block-sized temporaries inside the kernel (xf / diff / gated).
    per_b_vmem = 4 * per_b_native + 3 * per_b_f32

    try:
        info = pltpu.get_tpu_info()
        vmem_cap = int(getattr(info, "vmem_capacity_bytes", 64 << 20))
    except Exception:  # be conservative (v7x per-core VMEM) if query unavailable
        vmem_cap = 64 << 20
    vmem_budget = (vmem_cap * 3) // 4                # leave compiler headroom

    bt = max(1, min(B,
                    block_bytes_target // max(per_b_native, 1),
                    (vmem_budget - (2 << 20)) // max(per_b_vmem, 1)))
    # Keep >= 2 grid steps when B >= 2 so both v7x TensorCores get work.
    if B >= 2 and (B + bt - 1) // bt < 2:
        bt = (B + 1) // 2
    grid = (B + bt - 1) // bt                        # tail block is masked by Pallas
    # TODO(synk): for B == 1 samples whose activations exceed the VMEM budget,
    # split into an HW-tiled stats kernel + apply kernel (also restores the
    # 2-TC split on v7x for a single huge sample).

    k = int(conv_kernel.shape[0])
    # Fold the 0.5*(mean+std) term into the sigmoid-ed pooling weights.
    wg = (0.5 + jax.nn.sigmoid(weight_param[:2].astype(jnp.float32)))
    ck = conv_kernel.astype(jnp.float32)

    vmem_limit = int(min(max(bt * per_b_vmem + (2 << 20), 16 << 20), vmem_budget))

    kernel = functools.partial(mca_gate_kernel, hw_true=HW, k=k)

    cost = pl.CostEstimate(
        flops=5 * B * C * HW + (2 * k + 10) * B * C,
        transcendentals=2 * B * C,
        bytes_accessed=2 * B * C * HW * itemsize)

    out = pl.pallas_call(
        kernel,
        out_shape=jax.ShapeDtypeStruct((B, C, HW), x.dtype),
        grid=(grid,),
        in_specs=[
            pl.BlockSpec(memory_space=pltpu.MemorySpace.SMEM),   # wg (2,)
            pl.BlockSpec(memory_space=pltpu.MemorySpace.SMEM),   # ck (k,)
            pl.BlockSpec((bt, C, HW), lambda b: (b, 0, 0)),      # x block
        ],
        out_specs=pl.BlockSpec((bt, C, HW), lambda b: (b, 0, 0)),
        compiler_params=pltpu.CompilerParams(
            dimension_semantics=("parallel",),
            vmem_limit_bytes=vmem_limit),
        cost_estimate=cost,
    )(wg, ck, xf)

    return out.reshape(B, C, H, W)


def mca_gate_ref(x, weight_param, conv_kernel):
    """Pure-JAX reference mirroring the PyTorch forward (computed in f32)."""
    B, C, H, W = x.shape
    xf = x.astype(jnp.float32).reshape(B, C, -1)
    mean = xf.mean(axis=2, keepdims=True)
    std = jnp.sqrt(((xf - mean) ** 2).sum(axis=2, keepdims=True) / (H * W - 1))
    w = jax.nn.sigmoid(weight_param.astype(jnp.float32))
    out = 0.5 * (mean + std) + w[0] * mean + w[1] * std          # (B, C, 1)
    k = conv_kernel.shape[0]
    pad = (k - 1) // 2
    seq = out[:, :, 0]                                           # (B, C)
    padded = jnp.pad(seq, ((0, 0), (pad, pad)))
    ckf = conv_kernel.astype(jnp.float32)
    conv = jnp.stack(
        [jnp.sum(padded[:, c:c + k] * ckf, axis=1) for c in range(C)],
        axis=1)                                                  # (B, C)
    gate = jax.nn.sigmoid(conv)[:, :, None, None]
    return xf.reshape(B, C, H, W) * gate


def _check(key, shape, k_size, dtype, atol, rtol):
    k_x, k_w, k_c = jax.random.split(key, 3)
    B, C, H, W = shape
    x = jax.random.normal(k_x, shape, dtype=jnp.float32).astype(dtype)
    # self.weight = torch.rand(3)  -> uniform [0, 1); forward uses weight[0:2]
    weight_param = jax.random.uniform(k_w, (3,), dtype=jnp.float32)
    # Conv2d(1, 1, (1, k_size), bias=False) weight, flattened to (k_size,)
    conv_kernel = jax.random.uniform(
        k_c, (k_size,), dtype=jnp.float32, minval=-0.5, maxval=0.5)

    out = jax.block_until_ready(mca_gate(x, weight_param, conv_kernel))
    assert out.shape == shape and out.dtype == dtype
    ref = mca_gate_ref(x, weight_param, conv_kernel)
    assert jnp.allclose(out.astype(jnp.float32), ref, atol=atol, rtol=rtol), (
        f"mismatch vs reference for shape={shape} dtype={dtype}")


if __name__ == "__main__":
    keys = jax.random.split(jax.random.PRNGKey(0), 4)
    # Baseline case.
    _check(keys[0], (2, 4, 16, 16), 3, jnp.float32, 2e-5, 2e-5)
    # HW % 128 != 0 (no wrapper pad) + partial tail batch block (B=3, bt=2).
    _check(keys[1], (3, 8, 14, 14), 5, jnp.float32, 2e-5, 2e-5)
    # Native bf16 I/O end-to-end.
    _check(keys[2], (2, 8, 8, 8), 3, jnp.bfloat16, 3e-2, 3e-2)
    # Lane-aligned channel count -> pltpu.roll path for the 1xK channel conv.
    _check(keys[3], (1, 128, 8, 8), 3, jnp.float32, 2e-5, 2e-5)
    print("KERNEL_OK")
</pallas_src>

<mosaic_0001>
module attributes {stable_mosaic.version = 11 : i64} {
  func.func @mca_gate_kernel(%arg0: i32, %arg1: memref<2xf32, #tpu.memory_space<smem>>, %arg2: memref<3xf32, #tpu.memory_space<smem>>, %arg3: memref<1x4x256xf32, #tpu.memory_space<vmem>>, %arg4: memref<1x4x256xf32, #tpu.memory_space<vmem>>) attributes {dimension_semantics = [#tpu.dimension_semantics<parallel>], iteration_bounds = array<i64: 2>, scalar_prefetch = 0 : i64, scratch_operands = 0 : i64, tpu.core_type = #tpu.core_type<tc>, window_params = [{transform_indices = @transform_0, window_bounds = array<i64: 2>}, {transform_indices = @transform_1, window_bounds = array<i64: 3>}, {transform_indices = @transform_2, window_bounds = array<i64: 1, 4, 256>}, {transform_indices = @transform_3, window_bounds = array<i64: 1, 4, 256>}]} {
    %c0 = arith.constant 0 : index
    %c0_0 = arith.constant 0 : index
    %c0_1 = arith.constant 0 : index
    %0 = vector.load %arg3[%c0, %c0_0, %c0_1] : memref<1x4x256xf32, #tpu.memory_space<vmem>>, vector<1x4x256xf32>
    %cst = arith.constant dense<0.000000e+00> : vector<1x4xf32>
    %1 = vector.multi_reduction <add>, %0, %cst [2] : vector<1x4x256xf32> to vector<1x4xf32>
    %cst_2 = arith.constant 3.906250e-03 : f32
    %2 = vector.broadcast %cst_2 : f32 to vector<1x4xf32>
    %3 = arith.mulf %1, %2 : vector<1x4xf32>
    %4 = vector.shape_cast %3 : vector<1x4xf32> to vector<1x4x1xf32>
    %5 = vector.broadcast %4 : vector<1x4x1xf32> to vector<1x4x256xf32>
    %6 = arith.subf %0, %5 : vector<1x4x256xf32>
    %7 = arith.mulf %6, %6 : vector<1x4x256xf32>
    %cst_3 = arith.constant dense<0.000000e+00> : vector<1x4xf32>
    %8 = vector.multi_reduction <add>, %7, %cst_3 [2] : vector<1x4x256xf32> to vector<1x4xf32>
    %cst_4 = arith.constant 0.00392156886 : f32
    %9 = vector.broadcast %cst_4 : f32 to vector<1x4xf32>
    %10 = arith.mulf %8, %9 : vector<1x4xf32>
    %11 = math.sqrt %10 : vector<1x4xf32>
    %c0_5 = arith.constant 0 : index
    %12 = memref.load %arg1[%c0_5] : memref<2xf32, #tpu.memory_space<smem>>
    %13 = vector.broadcast %12 : f32 to vector<1x4xf32>
    %14 = arith.mulf %13, %3 : vector<1x4xf32>
    %c1 = arith.constant 1 : index
    %15 = memref.load %arg1[%c1] : memref<2xf32, #tpu.memory_space<smem>>
    %16 = vector.broadcast %15 : f32 to vector<1x4xf32>
    %17 = arith.mulf %16, %11 : vector<1x4xf32>
    %18 = arith.addf %14, %17 : vector<1x4xf32>
    %cst_6 = arith.constant 0.000000e+00 : f32
    %19 = vector.broadcast %cst_6 : f32 to vector<1x4xf32>
    %c0_7 = arith.constant 0 : index
    %20 = memref.load %arg2[%c0_7] : memref<3xf32, #tpu.memory_space<smem>>
    %cst_8 = arith.constant 0.000000e+00 : f32
    %21 = vector.broadcast %cst_8 : f32 to vector<1x1xf32>
    %22 = vector.extract_strided_slice %18 {offsets = [0, 0], sizes = [1, 3], strides = [1, 1]} : vector<1x4xf32> to vector<1x3xf32>
    %23 = tpu.concatenate %21, %22 in 1 : vector<1x1xf32>, vector<1x3xf32> -> vector<1x4xf32>
    %24 = vector.broadcast %20 : f32 to vector<1x4xf32>
    %25 = arith.mulf %24, %23 : vector<1x4xf32>
    %26 = arith.addf %19, %25 : vector<1x4xf32>
    %c1_9 = arith.constant 1 : index
    %27 = memref.load %arg2[%c1_9] : memref<3xf32, #tpu.memory_space<smem>>
    %28 = vector.broadcast %27 : f32 to vector<1x4xf32>
    %29 = arith.mulf %28, %18 : vector<1x4xf32>
    %30 = arith.addf %26, %29 : vector<1x4xf32>
    %c2 = arith.constant 2 : index
    %31 = memref.load %arg2[%c2] : memref<3xf32, #tpu.memory_space<smem>>
    %32 = vector.extract_strided_slice %18 {offsets = [0, 1], sizes = [1, 3], strides = [1, 1]} : vector<1x4xf32> to vector<1x3xf32>
    %cst_10 = arith.constant 0.000000e+00 : f32
    %33 = vector.broadcast %cst_10 : f32 to vector<1x1xf32>
    %34 = tpu.concatenate %32, %33 in 1 : vector<1x3xf32>, vector<1x1xf32> -> vector<1x4xf32>
    %35 = vector.broadcast %31 : f32 to vector<1x4xf32>
    %36 = arith.mulf %35, %34 : vector<1x4xf32>
    %37 = arith.addf %30, %36 : vector<1x4xf32>
    %38 = arith.negf %37 : vector<1x4xf32>
    %39 = math.exp %38 : vector<1x4xf32>
    %cst_11 = arith.constant 1.000000e+00 : f32
    %40 = vector.broadcast %cst_11 : f32 to vector<1x4xf32>
    %41 = arith.addf %40, %39 : vector<1x4xf32>
    %42 = arith.divf %40, %41 : vector<1x4xf32>
    %43 = vector.shape_cast %42 : vector<1x4xf32> to vector<1x4x1xf32>
    %44 = vector.broadcast %43 : vector<1x4x1xf32> to vector<1x4x256xf32>
    %45 = arith.mulf %0, %44 : vector<1x4x256xf32>
    %c0_12 = arith.constant 0 : index
    %c0_13 = arith.constant 0 : index
    %c0_14 = arith.constant 0 : index
    %46 = vector.load %arg4[%c0_12, %c0_13, %c0_14] : memref<1x4x256xf32, #tpu.memory_space<vmem>>, vector<1x4x256xf32>
    tpu.vector_store %arg4[%c0_12, %c0_13, %c0_14], %45 {strides = array<i32>} : memref<1x4x256xf32, #tpu.memory_space<vmem>>, vector<1x4x256xf32>,
    return
  }
  func.func @transform_0(%arg0: i32) -> i32 {
    %c0_i32 = arith.constant 0 : i32
    %c0_i32_0 = arith.constant 0 : i32
    return %c0_i32 : i32
  }
  func.func @transform_1(%arg0: i32) -> i32 {
    %c0_i32 = arith.constant 0 : i32
    %c0_i32_0 = arith.constant 0 : i32
    return %c0_i32 : i32
  }
  func.func @transform_2(%arg0: i32) -> (i32, i32, i32) {
    %c0_i32 = arith.constant 0 : i32
    %c0_i32_0 = arith.constant 0 : i32
    %c0_i32_1 = arith.constant 0 : i32
    return %arg0, %c0_i32, %c0_i32_0 : i32, i32, i32
  }
  func.func @transform_3(%arg0: i32) -> (i32, i32, i32) {
    %c0_i32 = arith.constant 0 : i32
    %c0_i32_0 = arith.constant 0 : i32
    %c0_i32_1 = arith.constant 0 : i32
    return %arg0, %c0_i32, %c0_i32_0 : i32, i32, i32
  }
}

</mosaic_0001>

<bundles_post_ra>
// kernel: tpu_custom_call.1
= control target key start
LH: loop header
LB: loop body
LE: loop exit
PB: predicated region body
PF: predicated region fallthrough
CT: control target
= control target key end

     0   :  { %8 = vsyncpa [#allocation5], 0  ;;  %s911_s0 = inlined_call_operand.hbm [shape: f32[2], index: 0, kind: input, shape index: {}]   ;;  %s912_s1 = inlined_call_operand.vmem [shape: f32[3], index: 1, kind: input, shape index: {}]   ;;  %s913_s2 = inlined_call_operand.hbm [shape: f32[2,4,256], index: 2, kind: input, shape index: {}]   ;;  %s914_s3 = inlined_call_operand.hbm [shape: f32[2,4,256], index: 3, kind: output, shape index: {}]  }
   0x1   :  { %9 = vsyncpa [#allocation6], 0 }
   0x2   :  { %10 = vsyncpa [#allocation3], 0 }
   0x3   :  { %12 = vsyncpa [#allocation3 + $0x1], 0 }
   0x4   :  { %13 = vsyncpa [#allocation4], 0 }
   0x5   :  { %15 = vsyncpa [#allocation4 + $0x1], 0  ;;  %s688_s12 = smov 0   ;;  %s690_s13 = smov 0  }
   0x6   :  { %s692_s14 = smov 0   ;;  %s694_s15 = smov 0  }
   0x7 LB: > { %s709_s16 = sadd.s32 4294967295, %s661_s15   ;;  %s430_s17 = sadd.s32 4294967294, %s661_s15   ;;  %s661_s15 = sphi %s694_s15, %s937_s15   ;;  %s657_s14 = sphi %s692_s14, %s936_s14   ;;  %s653_s13 = sphi %s690_s13, %s935_s13   ;;  %s649_s12 = sphi %s688_s12, %s934_s12  }
   0x8   : > { %p83_p0 = scmp.ne.s32.totalorder %s653_s13, %s649_s12  ;;  %p915_p1 = scmp.eq.s32.totalorder %s709_s16, 0 }
   0x9   : > { %p113_p3 = scmp.eq.s32.totalorder %s430_s17, 1  ;;  %p431_p5 = scmp.ge.s32.totalorder %s661_s15, 1 }
   0xa   : > { %p718_p4 = por %p915_p1, %p83_p0  ;;  %p120_p7 = scmp.lt.s32.totalorder %s661_s15, 3 }
   0xb   : > { %p723_p6 = por %p113_p3, %p83_p0  ;;  %s142_s23 = sshll.u32 %s912_s1, 4  ;;  %s143_s23 = int_to_ptr.vmem [resolvable:$true] %s142_s23 }
   0xc   : > { %s918_s18 = scalar_select %p718_p4, 1, 0 }
   0xd   : > { %s919_s19 = scalar_select %p723_p6, 1, 0 }
   0xe   : > { %p728_p8 = pnand %p431_p5, %p120_p7  ;;  %s739_s24 = sadd.s32 1, %s661_s15  }
   0xf   : > { %s67_s26 = ssub.s32 %s661_s15, %s739_s24  ;;  %s70_s27 = sadd.s32 1, %s657_s14 }
  0x10   : > { %p466_p10 = pneg %p728_p8  ;;  %p750_p12 = scmp.eq.s32.totalorder %s67_s26, 0 }
  0x11   : > { %s529_s4 = scalar_lea.hbm %s911_s0, 16 }
  0x12   : > { %p743_p11 = pnand %p466_p10, %p915_p1  ;;  %p530_p13 = scmp.ne.s32.totalorder %s911_s0, %s529_s4 }
  0x13   : > { %p536_p7 = scmp.lt.u32.totalorder %s529_s4, %s911_s0 }
  0x14   : > { %p531_p0 = pneg %p743_p11 }
  0x16   : > { %p532_p3 = pnand %p531_p0, %p530_p13 }
  0x18   : > { %p533_p5 = pneg %p532_p3 }
  0x1a   : > { %p538_p10 = pnand %p536_p7, %p533_p5 }
  0x1c   : > { %541 = shalt.err (!%p538_p10)
}
  0x1d   : > { %s663_s9 = smov [#allocation2]   ;;  %s542_s17 = scalar_lea.vmem %s143_s23, 16 }
  0x1e   : > { %469 = dma.hbm_to_smem (!%p743_p11), %s911_s0, 16, %s663_s9, [#allocation5]  }
  0x1f   : > { %p543_p9 = scmp.ne.s32.totalorder %s143_s23, %s542_s17  ;;  %p550_p6 = scmp.lt.s32.totalorder %s143_s23, %s143_s23 }
  0x20   : > { %p551_p13 = scmp.lt.s32.totalorder %s542_s17, %s542_s17 }
  0x21   : > { %p545_p1 = pnand %p543_p9, %p531_p0 }
  0x22   : > { %p552_p3 = por %p551_p13, %p550_p6 }
  0x23   : > { %p546_p2 = pneg %p545_p1 }
  0x25   : > { %p553_p4 = pnand %p552_p3, %p546_p2 }
  0x27   : > { %556 = shalt.err (!%p553_p4)
}
  0x28   : > { %s664_s21 = smov [#allocation7]   ;;  %p77_p1 = scmp.ne.s32.totalorder %s657_s14, %s653_s13 }
  0x29   : > { %472 = dma.vmem_to_smem (!%p743_p11), %s143_s23, 16, %s664_s21, [#allocation6]  }
  0x2a   : > { %s775_s22 = scalar_select %p750_p12, %s657_s14, %s70_s27  }
  0x2b   : > { %p78_p6 = scmp.eq.s32.totalorder %s661_s15, 0  ;;  %p483_p2 = scmp.lt.s32.totalorder %s661_s15, 2 }
  0x2c   : > { %s153_s26 = sand.u32 1, %s657_s14   ;;  %p923_p9 = scmp.eq.s32.totalorder %s709_s16, 1 }
  0x2d   : > { %p79_p4 = por %p78_p6, %p77_p1  ;;  %s435_s29 = sshll.u32 %s153_s26, 3 }
  0x2e   : > { %p784_p0 = por %p923_p9, %p77_p1  ;;  %s452_s30 = sshll.u32 %s661_s15, 7 }
  0x2f   : > { %s792_s6 = scalar_lea.hbm %s913_s2, %s452_s30  ;;  %s157_s23 = scalar_lea.vmem [#allocation8], %s435_s29 }
  0x30   : > { %s924_s25 = scalar_select %p784_p0, 1, 0 }
  0x31   : > { %s165_s27 = sshll.u32 %s157_s23, 4  ;;  %p796_p11 = pnand %p483_p2, %p79_p4  ;;  %s794_s27 = int_to_ptr.vmem [resolvable:$true] %s165_s27 }
  0x32   : > { %s154_s7 = scalar_lea.sflag [#allocation3], %s153_s26  ;;  %s557_s8 = scalar_lea.hbm %s792_s6, 128 }
  0x33   : > { %p558_p12 = scmp.ne.s32.totalorder %s792_s6, %s557_s8  ;;  %p559_p5 = pneg %p796_p11 }
  0x34   : > { %s562_s11 = scalar_lea.hbm %s913_s2, 256  ;;  %p563_p13 = scmp.lt.u32.totalorder %s792_s6, %s913_s2 }
  0x35   : > { %p560_p7 = pnand %p559_p5, %p558_p12  ;;  %p564_p3 = scmp.lt.u32.totalorder %s562_s11, %s557_s8 }
  0x36   : > { %p566_p6 = scmp.lt.u32.totalorder %s557_s8, %s792_s6 }
  0x37   : > { %p561_p10 = pneg %p560_p7  ;;  %p565_p1 = por %p564_p3, %p563_p13 }
  0x39   : > { %p567_p2 = por %p566_p6, %p565_p1 }
  0x3b   : > { %p568_p4 = pnand %p567_p2, %p561_p10 }
  0x3d   : > { %571 = shalt.err (!%p568_p4)
}
  0x3e   : > { %s572_s26 = scalar_lea.vmem %s794_s27, 128  ;;  %s665_s29 = smov [#allocation8]  }
  0x3f   : > { %p573_p9 = scmp.ne.s32.totalorder %s794_s27, %s572_s26  ;;  %s577_s30 = sshll.u32 %s665_s29, 4  ;;  %s578_s30 = int_to_ptr.vmem [resolvable:$false] %s577_s30 }
  0x40   : > { %s579_s4 = scalar_lea.vmem %s578_s30, 256  ;;  %p580_p0 = scmp.lt.s32.totalorder %s794_s27, %s578_s30 }
  0x41   : > { %p575_p12 = pnand %p573_p9, %p559_p5  ;;  %p581_p13 = scmp.lt.s32.totalorder %s579_s4, %s572_s26 }
  0x43   : > { %p576_p7 = pneg %p575_p12  ;;  %p582_p3 = por %p581_p13, %p580_p0 }
  0x45   : > { %p583_p1 = pnand %p582_p3, %p576_p7 }
  0x47   : > { %586 = shalt.err (!%p583_p1)
}
  0x48   : > { %476 = dma.hbm_to_vmem [thread:$0]  (!%p796_p11), %s792_s6, 128, %s794_s27, %s154_s7  }
  0x49   : > { %174 = sbr.rel (%p728_p8) target bundleno = 584 (0x248), region = 32  ;;  %p926_p5 = scmp.eq.s32.totalorder (!%p728_p8), %s709_s16, 0 }
  0x50   : > { %632 = dma.done.wait (%p926_p5), [#allocation5], 16   ;;  %p927_p10 = pmov %p926_p5 }
  0x51   : > { %p928_p6 = pmov %p926_p5 }
  0x52   : > { %634 = vsyncadd (%p927_p10), [#allocation5], 4294967280 }
  0x53   : > { %636 = dma.done.wait (%p928_p6), [#allocation6], 16   ;;  %p929_p0 = pmov %p926_p5 }
  0x54   : > { %s836_s5 = sand.u32 1, %s653_s13   ;;  %p930_p8 = scmp.ne.s32.totalorder %s918_s18, 0 }
  0x55   : > { %638 = vsyncadd (%p929_p0), [#allocation6], 4294967280  ;;  %s441_s20 = sshll.u32 %s836_s5, 3  ;;  %s185_s6 = scalar_lea.sflag [#allocation3], %s836_s5 }
  0x56   : > { %s188_s23 = scalar_lea.vmem [#allocation8], %s441_s20 }
  0x57   : > { %640 = dma.done.wait (%p930_p8), %s185_s6, 128  }
  0x58   : > { %642 = vsyncadd (%p930_p8), %s185_s6, 4294967168 }
  0x59   : > { %193 = sfence }
  0x5a   : > { %v846_v0 = vld [vmem:[%s188_s23] sm:$0xff]  ;;  %vm216_vm0 = vcmask 1043456   ;;  %v666_v5 = vmov 839922192   ;;  %v227_v7 = vlaneseq  ;;  %s250_s18 = sld [smem:[#allocation2]]  ;;  %s443_s27 = sld [smem:[#allocation2 + $0x1]] }
  0x5b   : > { %v214_v1 = vcombine.high %v846_v0, %v846_v0  ;;  %v217_v2 = vsel %vm216_vm0, %v846_v0, 0.0  ;;  %v225_v6 = vunpack.c.l.s4 %v666_v5  ;;  %s444_s28 = sld [smem:[#allocation7 + $0x1]]  ;;  %s257_s7 = sld [smem:[#allocation7]]  ;;  %vm267_vm3 = vcmask 7168  }
  0x5c   : > { %v228_v9 = vshrl.u32 %v227_v7, 7  ;;  %v260_v22 = vand.u32 127, %v227_v7  ;;  %s445_s8 = sld [smem:[#allocation7 + $0x2]]  ;;  %vm289_vm4 = vcmask 23552   ;;  %s453_s9 = sshll.u32 %s709_s16, 7 }
  0x5d   : > { %v218_v3 = vsel %vm216_vm0, %v214_v1, 0.0  ;;  %v226_v8 = vunpack.c.0.s8 %v225_v6  ;;  %s211_s10 = scalar_lea.vmem [#allocation9], %s441_s20  ;;  %s867_s26 = scalar_lea.hbm %s914_s3, %s453_s9 }
  0x5e   : > { %v219_v4 = vadd.f32 %v218_v3, %v217_v2  ;;  %v261_v24 = vadd.s32 4294967295, %v260_v22  ;;  %v283_v26 = vadd.s32 1, %v260_v22  ;;  %v278_v38 = vsub.s32 %v260_v22, %v228_v9  ;;  %s336_s11 = sshll.u32 %s211_s10, 4  ;;  %s322_s29 = scalar_lea.sflag [#allocation4], %s836_s5  ;;  %s869_s11 = int_to_ptr.vmem [resolvable:$true] %s336_s11 }
  0x5f   : > { %v853_v10 = vsub.s32 %v226_v8, %v228_v9  ;;  %v305_v55 = vsub.s32 0, %v228_v9  ;;  %s587_s16 = scalar_lea.vmem %s869_s11, 128  ;;  %p931_p2 = scmp.ne.s32.totalorder %s924_s25, 0 }
  0x60   : > { %220 = vadd.xlane.f32.xlu0 %v219_v4  ;;  %v251_v27 = vstv %s250_s18  ;;  %v254_v28 = vstv %s443_s27  ;;  %v264_v34 = vsub.s32 %v261_v24, %v228_v9  ;;  %v286_v35 = vsub.s32 %v283_v26, %v228_v9  ;;  %p588_p11 = scmp.ne.s32.totalorder %s869_s11, %s587_s16  ;;  %s667_s30 = smov [#allocation9]  }
  0x61   : > { %v273_v36 = vstv %s444_s28  ;;  %v269_v39 = vstv %s257_s7  ;;  %s591_s4 = sshll.u32 %s667_s30, 4  ;;  %s592_s4 = int_to_ptr.vmem [resolvable:$false] %s591_s4 }
  0x62   : > { %v291_v43 = vstv %s445_s8  ;;  %p589_p4 = pnand %p588_p11, %p931_p2  ;;  %s593_s20 = scalar_lea.vmem %s592_s4, 256 }
  0x63   : > { %p594_p12 = scmp.lt.s32.totalorder %s869_s11, %s592_s4  ;;  %p595_p7 = scmp.lt.s32.totalorder %s593_s20, %s587_s16 }
  0x64   : > { %p590_p9 = pneg %p589_p4 }
  0x65   : > { %p596_p13 = por %p595_p7, %p594_p12 }
  0x67   : > { %p597_p3 = pnand %p596_p13, %p590_p9 }
  0xed   : > { %v221_v11 = vpop.xlane.xlu0 %220 }
  0xee   : > { %v222_v12 = vmul.f32 0.00390625, %v221_v11 }
  0xf0   : > { %v230_v13 = vrot.slane %v222_v12, %v853_v10  ;;  %v252_v32 = vmul.f32 %v251_v27, %v222_v12 }
  0xf2   : > { %v232_v14 = vsub.f32 %v846_v0, %v230_v13 }
  0xf4   : > { %v233_v15 = vmul.f32 %v232_v14, %v232_v14 }
  0xf6   : > { %v235_v16 = vcombine.high %v233_v15, %v233_v15  ;;  %v237_v17 = vsel %vm216_vm0, %v233_v15, 0.0 }
  0xf8   : > { %v238_v18 = vsel %vm216_vm0, %v235_v16, 0.0 }
  0xf9   : > { %v239_v19 = vadd.f32 %v238_v18, %v237_v17 }
  0xfb   : > { %240 = vadd.xlane.f32.xlu0 %v239_v19 }
 0x188   : > { %v241_v20 = vpop.xlane.xlu0 %240 }
 0x189   : > { %v242_v21 = vmul.f32 0.003921569, %v241_v20 }
 0x18b   : > { %523 = vrsqrt.f32 %v242_v21  ;;  %vm245_vm1 = vcmp.eq.f32.partialorder %v242_v21, inf  ;;  %v248_v29 = vand.u32 2147483648, %v242_v21  ;;  %vm247_vm2 = vcmp.eq.f32.partialorder %v242_v21, 0.0 }
 0x195   : > { %v524_v23 = vpop.eup %523 }
 0x196   : > { %v244_v25 = vmul.f32 %v524_v23, %v242_v21 }
 0x198   : > { %v246_v30 = vsel %vm245_vm1, %v242_v21, %v244_v25 }
 0x199   : > { %v249_v31 = vsel %vm247_vm2, %v248_v29, %v246_v30 }
 0x19a   : > { %v255_v33 = vmul.f32 %v254_v28, %v249_v31 }
 0x19c   : > { %v256_v37 = vadd.f32 %v255_v33, %v252_v32 }
 0x19e   : > { %v265_v40 = vrot.slane %v256_v37, %v264_v34  ;;  %v274_v41 = vmul.f32 %v273_v36, %v256_v37  ;;  %v287_v42 = vrot.slane %v256_v37, %v286_v35 }
 0x1a0   : > { %v268_v44 = vsel %vm267_vm3, 0.0, %v265_v40  ;;  %v279_v45 = vrot.slane %v274_v41, %v278_v38  ;;  %v290_v46 = vsel %vm289_vm4, %v287_v42, 0.0 }
 0x1a1   : > { %v270_v47 = vmul.f32 %v269_v39, %v268_v44  ;;  %v292_v48 = vmul.f32 %v291_v43, %v290_v46 }
 0x1a3   : > { %v281_v49 = vadd.f32 %v279_v45, %v270_v47  ;;  %v294_v50 = vrot.slane %v292_v48, 1 }
 0x1a5   : > { %v296_v51 = vadd.f32 %v294_v50, %v281_v49 }
 0x1a7   : > { %v446_v52 = vmul.f32 -1.442695, %v296_v51 }
 0x1a9   : > { %525 = vpow2.f32 %v446_v52 }
 0x1b3   : > { %v526_v53 = vpop.eup %525 }
 0x1b4   : > { %v300_v54 = vadd.f32 1.0, %v526_v53 }
 0x1b6   : > { %527 = vrcp.f32 %v300_v54 }
 0x1c0   : > { %v528_v56 = vpop.eup %527 }
 0x1c1   : > { %v306_v57 = vrot.slane %v528_v56, %v305_v55 }
 0x1c3   : > { %308 = vbcast.lane.b32.xlu1 %v306_v57, 256 }
 0x235   : > { %v309_v58 = vpop.permute.xlu1 %308 }
 0x236   : > { %v317_v59 = vrot.slane %v309_v58, %v853_v10 }
 0x238   : > { %v319_v60 = vmul.f32 %v317_v59, %v846_v0 }
 0x23a   : > { %320 = vst [vmem:[%s211_s10] sm:$0xff] %v319_v60 }
 0x23b   : > { %600 = shalt.err (!%p597_p3)
}
 0x23c   : > { %s601_s5 = scalar_lea.hbm %s867_s26, 128  ;;  %s605_s18 = scalar_lea.hbm %s914_s3, 256 }
 0x23d   : > { %p602_p1 = scmp.ne.s32.totalorder %s867_s26, %s601_s5  ;;  %p606_p6 = scmp.lt.u32.totalorder %s867_s26, %s914_s3 }
 0x23e   : > { %p607_p0 = scmp.lt.u32.totalorder %s605_s18, %s601_s5  ;;  %p609_p11 = scmp.lt.u32.totalorder %s601_s5, %s867_s26 }
 0x23f   : > { %p603_p5 = pnand %p602_p1, %p931_p2 }
 0x240   : > { %p608_p8 = por %p607_p0, %p606_p6 }
 0x241   : > { %p604_p10 = pneg %p603_p5 }
 0x242   : > { %p610_p4 = por %p609_p11, %p608_p8 }
 0x244   : > { %p611_p9 = pnand %p610_p4, %p604_p10 }
 0x246   : > { %614 = shalt.err (!%p611_p9)
}
 0x247   : > { %464 = dma.vmem_to_hbm [thread:$0]  (%p931_p2), %s869_s11, 128, %s867_s26, %s322_s29  }
 0x248 PF: > { %s348_s7 = sand.u32 1, %s649_s12   ;;  %p932_p12 = scmp.ne.s32.totalorder %s919_s19, 0 }
 0x249   : > { %p933_p7 = scmp.ge.s32.totalorder %s661_s15, 2  ;;  %s349_s8 = scalar_lea.sflag [#allocation4], %s348_s7 }
 0x24b   : > { %p478_p13 = pnand %p933_p7, %p932_p12 }
 0x24d   : > { %644 = dma.done.wait (!%p478_p13), %s349_s8, 128  }
 0x24e   : > { %646 = vsyncadd (!%p478_p13), %s349_s8, 4294967168  ;;  %p18_p3 = scmp.ge.s32.totalorder %s739_s24, 4   ;;  %s934_s12 = smov %s653_s13 }
 0x24f   : > { %s935_s13 = smov %s657_s14  ;;  %s936_s14 = smov %s775_s22 }
 0x250   : > { %s937_s15 = smov %s739_s24  ;;  %20 = sbr.rel (!%p18_p3) target bundleno = 7 (0x7), region = 87 }
 0x257   :  { %354 = vsyncpa [#allocation3], 1 }
 0x258   :  { %356 = vsyncpa [#allocation3 + $0x1], 1 }
 0x259   :  { %357 = vsyncpa [#allocation4], 1 }
 0x25a   :  { %359 = vsyncpa [#allocation4 + $0x1], 1 }
 0x25b   :  { %360 = vsyncpa [#allocation5], 1 }
 0x25c   :  { %362 = vsyncpa [#allocation5 + $0x1], 1 }
 0x25d   :  { %363 = vsyncpa [#allocation6], 1 }
 0x25e   :  { %365 = vsyncpa [#allocation6 + $0x1], 1 }

</bundles_post_ra>
